<compile_context>
chip_gen: v7x
topology: tpu7x:2x2x1
jax: 0.10.0
libtpu: 0.0.40
codegen_flags: <defaults>
</compile_context>

<pallas_src>
import functools
from typing import NamedTuple

import jax
import jax.numpy as jnp
from jax.experimental import pallas as pl
from jax.experimental.pallas import tpu as pltpu

_INV_SQRT2 = 0.7071067811865476


def _round_up(n: int, m: int) -> int:
    return ((n + m - 1) // m) * m


def _gelu(h, approximate: bool):
    if approximate:
        # tanh formulation routes the transcendental to the EUP (otherwise idle
        # in this kernel) -- cheaper, ~1e-3 off torch.nn.GELU(); good on v5e.
        return jax.nn.gelu(h, approximate=True)
    # Exact erf: matches the torch.nn.GELU() default formulation.
    return 0.5 * h * (1.0 + jax.lax.erf(h * _INV_SQRT2))


# -----------------------------------------------------------------------------
# Kernels
# -----------------------------------------------------------------------------
def _adapter_kernel_resident(x_ref, w1_ref, b1_ref, w2_ref, b2_ref, o_ref, *,
                             approximate_gelu: bool, precision, mxu_dtype):
    """One row tile per grid step; W1/b1/W2/b2 fully resident in VMEM."""
    x = x_ref[...]                                     # native dtype for the MXU
    xm = x if mxu_dtype is None else x.astype(mxu_dtype)
    w1 = w1_ref[...] if mxu_dtype is None else w1_ref[...].astype(mxu_dtype)

    h = jnp.dot(xm, w1, preferred_element_type=jnp.float32, precision=precision)
    h = h + b1_ref[...].astype(jnp.float32)
    h = _gelu(h, approximate_gelu)

    w2 = w2_ref[...] if mxu_dtype is None else w2_ref[...].astype(mxu_dtype)
    out = jnp.dot(h.astype(w2.dtype), w2,
                  preferred_element_type=jnp.float32, precision=precision)
    out = out + b2_ref[...].astype(jnp.float32) + x.astype(jnp.float32)
    o_ref[...] = out.astype(o_ref.dtype)


def _adapter_kernel_stream(x_ref, w1_ref, b1_ref, w2_ref, b2_ref, xcol_ref,
                           o_ref, h_ref, *,
                           approximate_gelu: bool, precision, mxu_dtype):
    """Row-tile x column-tile grid.  W1 stays resident; W2/b2 are streamed per
    output-column tile.  The bottleneck activation h is computed once per row
    tile (j == 0) and kept in VMEM scratch across the column axis."""
    j = pl.program_id(1)

    @pl.when(j == 0)
    def _():
        x = x_ref[...]
        xm = x if mxu_dtype is None else x.astype(mxu_dtype)
        w1 = w1_ref[...] if mxu_dtype is None else w1_ref[...].astype(mxu_dtype)
        h = jnp.dot(xm, w1, preferred_element_type=jnp.float32,
                    precision=precision)
        h = h + b1_ref[...].astype(jnp.float32)
        h_ref[...] = _gelu(h, approximate_gelu)

    w2 = w2_ref[...] if mxu_dtype is None else w2_ref[...].astype(mxu_dtype)
    out = jnp.dot(h_ref[...].astype(w2.dtype), w2,
                  preferred_element_type=jnp.float32, precision=precision)
    out = out + b2_ref[...].astype(jnp.float32) + xcol_ref[...].astype(jnp.float32)
    o_ref[...] = out.astype(o_ref.dtype)


# -----------------------------------------------------------------------------
# Static planning (runs in cheap Python, outside the jitted numeric graph)
# -----------------------------------------------------------------------------
class _Config(NamedTuple):
    stream_w2: bool
    tm: int
    tn: int
    single_buffer: bool
    vmem_limit_bytes: int


def _vmem_capacity_bytes() -> int:
    try:
        return int(pltpu.get_tpu_info().vmem_capacity_bytes)
    except Exception:                      # query unavailable (e.g. interpret)
        return 128 * 1024 * 1024           # v5e/v6e-class default


_BUFFERED1_OK = None


def _probe_kernel(w_ref, o_ref):
    o_ref[...] = w_ref[...] + 1.0


def _single_buffer_supported() -> bool:
    """One-time, targeted capability probe for pipeline_mode=pl.Buffered(1) on
    a grid-invariant BlockSpec.  Replaces the old blanket try/except around the
    real kernel, so genuine lowering/spec errors in the main kernel surface."""
    global _BUFFERED1_OK
    if _BUFFERED1_OK is None:
        if not hasattr(pl, "Buffered"):
            _BUFFERED1_OK = False
        else:
            try:
                out = pl.pallas_call(
                    _probe_kernel,
                    out_shape=jax.ShapeDtypeStruct((8, 128), jnp.float32),
                    grid=(2,),
                    in_specs=[pl.BlockSpec((8, 128), lambda i: (0, 0),
                                           pipeline_mode=pl.Buffered(1))],
                    out_specs=pl.BlockSpec((8, 128), lambda i: (0, 0)),
                )(jnp.zeros((8, 128), jnp.float32))
                jax.block_until_ready(out)
                _BUFFERED1_OK = True
            except Exception:   # only the Buffered(1) feature is probed here
                _BUFFERED1_OK = False
    return _BUFFERED1_OK


def _resident_tile_bytes(tm, E, Bd, itemsize):
    # Double-buffered x/out row tiles + in-kernel f32 temporaries
    # (h, f32 out, f32 residual cast of x) + h cast to the MXU dtype.
    return (4 * tm * E * itemsize
            + tm * (Bd + 2 * E) * 4
            + tm * Bd * itemsize)


def _stream_tile_bytes(tm, tn, E, Bd, itemsize, w_itemsize):
    return (2 * tm * E * itemsize              # full-E x row tile (2 buffers)
            + 2 * tm * tn * itemsize           # x column tile (residual)
            + 2 * tm * tn * itemsize           # out column tile
            + 2 * (Bd + 1) * tn * w_itemsize   # streamed W2/b2 column tiles
            + tm * Bd * 4                      # h scratch (f32)
            + 2 * tm * tn * 4                  # f32 out + residual temporaries
            + tm * Bd * itemsize               # h cast to MXU dtype
            + tm * E * itemsize)               # x cast at j == 0 (worst case)


def _plan(x_shape, x_dtype, w1_shape, w_dtype, tm, tn, force_stream_w2) -> _Config:
    B, S, E = x_shape
    Bd = w1_shape[1]
    M = B * S
    itemsize = jnp.dtype(x_dtype).itemsize
    w_itemsize = jnp.dtype(w_dtype).itemsize

    vmem_cap = _vmem_capacity_bytes()
    # Headroom for Mosaic internal scratch: ~54 MiB limit on v7x (64 MiB/TC),
    # ~109 MiB on v5e/v6e (128 MiB).
    vmem_limit = int(min(0.85 * vmem_cap, vmem_cap - 8 * 1024 * 1024))

    single_buffer = _single_buffer_supported()
    weight_buf = 1 if single_buffer else 2
    resident_w_bytes = weight_buf * (2 * E * Bd + Bd + E) * w_itemsize

    # Keep both weights resident only if they leave room for the pipelined
    # tiles (matters on v7x's 64 MiB/TC); otherwise stream W2 in column tiles.
    stream_w2 = bool(force_stream_w2) or (resident_w_bytes > 0.40 * vmem_cap)

    sub = 32 if itemsize == 1 else (16 if itemsize == 2 else 8)
    if tm is None:
        tm = 1024 if itemsize < 4 else 512
    tm = max(sub, _round_up(min(int(tm), _round_up(M, sub)), sub))
    # >= 4 row steps when M permits: feeds both v7x TensorCores on the
    # "parallel" axis and gives the BlockSpec pipeline something to overlap.
    if M >= 4 * sub:
        tm = min(tm, max(sub, _round_up(pl.cdiv(M, 4), sub)))

    if stream_w2:
        if tn is None:
            tn = min(E, 512)
        tn = min(int(tn), E)
        if tn < E:
            tn = min(E, max(128, _round_up(tn, 128)))   # lane-aligned columns
        w1_bytes = weight_buf * (E * Bd + Bd) * w_itemsize
        budget = max(int(0.50 * vmem_cap) - w1_bytes, 4 * 1024 * 1024)
        while tm > sub and _stream_tile_bytes(tm, tn, E, Bd, itemsize,
                                              w_itemsize) > budget:
            tm = max(sub, _round_up(tm // 2, sub))
    else:
        tn = E
        budget = max(int(0.50 * vmem_cap) - resident_w_bytes, 4 * 1024 * 1024)
        while tm > sub and _resident_tile_bytes(tm, E, Bd, itemsize) > budget:
            tm = max(sub, _round_up(tm // 2, sub))

    return _Config(stream_w2=bool(stream_w2), tm=int(tm), tn=int(tn),
                   single_buffer=bool(single_buffer),
                   vmem_limit_bytes=int(vmem_limit))


# -----------------------------------------------------------------------------
# Jitted numeric core
# -----------------------------------------------------------------------------
@functools.partial(jax.jit,
                   static_argnames=("cfg", "approximate_gelu", "precision",
                                    "mxu_dtype"))
def _adapter_jit(x, w1_t, b1, w2_t, b2, *, cfg: _Config, approximate_gelu,
                 precision, mxu_dtype):
    B, S, E = x.shape
    Bd = w1_t.shape[1]
    M = B * S
    tm, tn = cfg.tm, cfg.tn

    x2 = x.reshape(M, E)
    b1r = b1.reshape(1, Bd)
    b2r = b2.reshape(1, E)

    resident_kw = dict(pipeline_mode=pl.Buffered(1)) if cfg.single_buffer else {}

    itemsize = jnp.dtype(x.dtype).itemsize
    w_itemsize = jnp.dtype(w1_t.dtype).itemsize
    weight_bytes = (2 * E * Bd + Bd + E) * w_itemsize
    cost = pl.CostEstimate(
        flops=int(4 * M * E * Bd + 6 * M * E),
        transcendentals=int(M * Bd),
        bytes_accessed=int(2 * M * E * itemsize + weight_bytes),
    )
    kern_kw = dict(approximate_gelu=approximate_gelu, precision=precision,
                   mxu_dtype=mxu_dtype)

    if not cfg.stream_w2:
        call = pl.pallas_call(
            functools.partial(_adapter_kernel_resident, **kern_kw),
            out_shape=jax.ShapeDtypeStruct((M, E), x.dtype),
            grid_spec=pltpu.PrefetchScalarGridSpec(
                num_scalar_prefetch=0,
                grid=(pl.cdiv(M, tm),),
                in_specs=[
                    pl.BlockSpec((tm, E), lambda i: (i, 0)),                  # x row tile
                    pl.BlockSpec((E, Bd), lambda i: (0, 0), **resident_kw),   # W1^T
                    pl.BlockSpec((1, Bd), lambda i: (0, 0), **resident_kw),   # b1
                    pl.BlockSpec((Bd, E), lambda i: (0, 0), **resident_kw),   # W2^T
                    pl.BlockSpec((1, E), lambda i: (0, 0), **resident_kw),    # b2
                ],
                out_specs=pl.BlockSpec((tm, E), lambda i: (i, 0)),
            ),
            compiler_params=pltpu.CompilerParams(
                # TODO(synk): verify in an xprof trace that this axis actually
                # shards across both v7x TensorCores; if not, switch to a
                # leading CORE_PARALLEL axis.
                dimension_semantics=("parallel",),
                vmem_limit_bytes=cfg.vmem_limit_bytes,
            ),
            cost_estimate=cost,
        )
        out2 = call(x2, w1_t, b1r, w2_t, b2r)
    else:
        call = pl.pallas_call(
            functools.partial(_adapter_kernel_stream, **kern_kw),
            out_shape=jax.ShapeDtypeStruct((M, E), x.dtype),
            grid_spec=pltpu.PrefetchScalarGridSpec(
                num_scalar_prefetch=0,
                grid=(pl.cdiv(M, tm), pl.cdiv(E, tn)),
                in_specs=[
                    pl.BlockSpec((tm, E), lambda i, j: (i, 0)),                 # x (full E)
                    pl.BlockSpec((E, Bd), lambda i, j: (0, 0), **resident_kw),  # W1^T resident
                    pl.BlockSpec((1, Bd), lambda i, j: (0, 0), **resident_kw),  # b1
                    pl.BlockSpec((Bd, tn), lambda i, j: (0, j)),                # W2^T column (streamed)
                    pl.BlockSpec((1, tn), lambda i, j: (0, j)),                 # b2 column
                    pl.BlockSpec((tm, tn), lambda i, j: (i, j)),                # x column (residual)
                ],
                out_specs=pl.BlockSpec((tm, tn), lambda i, j: (i, j)),
                scratch_shapes=[pltpu.VMEM((tm, Bd), jnp.float32)],             # bottleneck h
            ),
            compiler_params=pltpu.CompilerParams(
                dimension_semantics=("parallel", "arbitrary"),
                vmem_limit_bytes=cfg.vmem_limit_bytes,
            ),
            cost_estimate=cost,
        )
        out2 = call(x2, w1_t, b1r, w2_t, b2r, x2)

    return out2.reshape(B, S, E)


# -----------------------------------------------------------------------------
# Public wrapper
# -----------------------------------------------------------------------------
def bottleneck_adapter(x, w1_t, b1, w2_t, b2, *, tm=None, tn=None,
                       approximate_gelu=False, precision=None, mxu_dtype=None,
                       force_stream_w2=False):
    """out = Linear2(GELU(Linear1(x))) + x   (torch BottleneckAdapter.forward).

    x: (B, S, E); w1_t: (E, Bd); b1: (Bd,); w2_t: (Bd, E); b2: (E,)
    (torch nn.Linear weights pre-transposed to (in, out) layout).

    Optional knobs:
      approximate_gelu: tanh GELU (EUP path); default False = exact erf parity.
      precision:        e.g. jax.lax.Precision.HIGHEST for torch-f32 parity
                        (default: TPU default precision, effectively bf16 MXU
                        passes with f32 accumulation).
      mxu_dtype:        e.g. jnp.bfloat16 fast MXU path for f32 inputs (bias /
                        GELU / residual stay f32).
      force_stream_w2:  force the column-tiled (streamed-W2) path.
    """
    cfg = _plan(tuple(x.shape), x.dtype, tuple(w1_t.shape), w1_t.dtype,
                tm, tn, force_stream_w2)
    return _adapter_jit(x, w1_t, b1, w2_t, b2, cfg=cfg,
                        approximate_gelu=bool(approximate_gelu),
                        precision=precision, mxu_dtype=mxu_dtype)


def init_params(key, embedding_dim, reduction_factor):
    bottleneck_dim = embedding_dim // reduction_factor
    k1, k2 = jax.random.split(key)
    # torch.nn.Linear weight is (out, in); _weights_init -> N(0, 0.02), bias 0.
    w1 = 0.02 * jax.random.normal(k1, (bottleneck_dim, embedding_dim), jnp.float32)
    b1 = jnp.zeros((bottleneck_dim,), jnp.float32)
    w2 = 0.02 * jax.random.normal(k2, (embedding_dim, bottleneck_dim), jnp.float32)
    b2 = jnp.zeros((embedding_dim,), jnp.float32)
    # Pass transposed (in, out) layouts to the kernel.
    return w1.T, b1, w2.T, b2


def _adapter_reference(x, w1_t, b1, w2_t, b2):
    """Pure-JAX f32 reference (exact erf GELU, HIGHEST-precision dots)."""
    xf = x.astype(jnp.float32)
    h = jnp.dot(xf, w1_t.astype(jnp.float32),
                precision=jax.lax.Precision.HIGHEST) + b1.astype(jnp.float32)
    h = 0.5 * h * (1.0 + jax.lax.erf(h * _INV_SQRT2))
    out = jnp.dot(h, w2_t.astype(jnp.float32),
                  precision=jax.lax.Precision.HIGHEST) + b2.astype(jnp.float32)
    return out + xf


if __name__ == "__main__":
    key = jax.random.PRNGKey(0)

    # --- 1. f32, fully-resident weights, default MXU precision ---------------
    E, rf, B, S = 32, 4, 2, 8
    kx, kp = jax.random.split(key)
    x = jax.random.normal(kx, (B, S, E), jnp.float32)
    w1_t, b1, w2_t, b2 = init_params(kp, E, rf)

    out = jax.block_until_ready(bottleneck_adapter(x, w1_t, b1, w2_t, b2))
    ref = _adapter_reference(x, w1_t, b1, w2_t, b2)
    assert out.shape == (B, S, E)
    assert jnp.allclose(out, ref, atol=2e-3, rtol=2e-3), "f32 resident mismatch"

    # --- 2. ragged M (M % tm != 0) + opt-in bf16 MXU fast path ----------------
    x_r = jax.random.normal(jax.random.PRNGKey(1), (2, 9, E), jnp.float32)
    out_r = jax.block_until_ready(
        bottleneck_adapter(x_r, w1_t, b1, w2_t, b2, tm=8,
                           mxu_dtype=jnp.bfloat16))
    ref_r = _adapter_reference(x_r, w1_t, b1, w2_t, b2)
    assert jnp.allclose(out_r, ref_r, atol=2e-2, rtol=2e-2), "ragged-M mismatch"

    # --- 3. streamed-W2 (column-tiled) fallback path --------------------------
    E2, rf2 = 256, 4
    kx2, kp2 = jax.random.split(jax.random.PRNGKey(2))
    x_s = jax.random.normal(kx2, (B, S, E2), jnp.float32)
    w1_t2, b1_2, w2_t2, b2_2 = init_params(kp2, E2, rf2)
    out_s = jax.block_until_ready(
        bottleneck_adapter(x_s, w1_t2, b1_2, w2_t2, b2_2,
                           force_stream_w2=True, tn=128))
    ref_s = _adapter_reference(x_s, w1_t2, b1_2, w2_t2, b2_2)
    assert jnp.allclose(out_s, ref_s, atol=1e-2, rtol=1e-2), "streamed-W2 mismatch"

    # --- 4. bf16 activations / weights end-to-end -----------------------------
    out_bf16 = jax.block_until_ready(
        bottleneck_adapter(x.astype(jnp.bfloat16), w1_t.astype(jnp.bfloat16),
                           b1, w2_t.astype(jnp.bfloat16), b2))
    assert jnp.allclose(out_bf16.astype(jnp.float32), ref,
                        atol=1e-1, rtol=1e-1), "bf16 mismatch"

    print("KERNEL_OK")
</pallas_src>

<mosaic_0001>
module attributes {stable_mosaic.version = 11 : i64} {
  func.func @_probe_kernel(%arg0: i32, %arg1: memref<8x128xf32, #tpu.memory_space<vmem>>, %arg2: memref<8x128xf32, #tpu.memory_space<vmem>>) attributes {dimension_semantics = [#tpu.dimension_semantics<arbitrary>], iteration_bounds = array<i64: 2>, scalar_prefetch = 0 : i64, scratch_operands = 0 : i64, tpu.core_type = #tpu.core_type<tc>, window_params = [{pipeline_mode = #tpu.pipeline_mode<synchronous>, transform_indices = @transform_0, window_bounds = array<i64: 8, 128>}, {pipeline_mode = #tpu.pipeline_mode<synchronous>, transform_indices = @transform_1, window_bounds = array<i64: 8, 128>}]} {
    %c0 = arith.constant 0 : index
    %c0_0 = arith.constant 0 : index
    %0 = vector.load %arg1[%c0, %c0_0] : memref<8x128xf32, #tpu.memory_space<vmem>>, vector<8x128xf32>
    %cst = arith.constant 1.000000e+00 : f32
    %1 = vector.broadcast %cst : f32 to vector<8x128xf32>
    %2 = arith.addf %0, %1 : vector<8x128xf32>
    %c0_1 = arith.constant 0 : index
    %c0_2 = arith.constant 0 : index
    %3 = vector.load %arg2[%c0_1, %c0_2] : memref<8x128xf32, #tpu.memory_space<vmem>>, vector<8x128xf32>
    tpu.vector_store %arg2[%c0_1, %c0_2], %2 {strides = array<i32>} : memref<8x128xf32, #tpu.memory_space<vmem>>, vector<8x128xf32>,
    return
  }
  func.func @transform_0(%arg0: i32) -> (i32, i32) {
    %c0_i32 = arith.constant 0 : i32
    %c0_i32_0 = arith.constant 0 : i32
    %c0_i32_1 = arith.constant 0 : i32
    return %c0_i32, %c0_i32_0 : i32, i32
  }
  func.func @transform_1(%arg0: i32) -> (i32, i32) {
    %c0_i32 = arith.constant 0 : i32
    %c0_i32_0 = arith.constant 0 : i32
    %c0_i32_1 = arith.constant 0 : i32
    return %c0_i32, %c0_i32_0 : i32, i32
  }
}

module attributes {stable_mosaic.version = 11 : i64} {
  func.func @_adapter_kernel_resident(%arg0: i32, %arg1: memref<16x32xf32, #tpu.memory_space<vmem>>, %arg2: memref<32x8xf32, #tpu.memory_space<vmem>>, %arg3: memref<1x8xf32, #tpu.memory_space<vmem>>, %arg4: memref<8x32xf32, #tpu.memory_space<vmem>>, %arg5: memref<1x32xf32, #tpu.memory_space<vmem>>, %arg6: memref<16x32xf32, #tpu.memory_space<vmem>>) attributes {dimension_semantics = [#tpu.dimension_semantics<parallel>], iteration_bounds = array<i64: 1>, scalar_prefetch = 0 : i64, scratch_operands = 0 : i64, tpu.core_type = #tpu.core_type<tc>, window_params = [{transform_indices = @transform_0, window_bounds = array<i64: 16, 32>}, {pipeline_mode = #tpu.pipeline_mode<synchronous>, transform_indices = @transform_1, window_bounds = array<i64: 32, 8>}, {pipeline_mode = #tpu.pipeline_mode<synchronous>, transform_indices = @transform_2, window_bounds = array<i64: 1, 8>}, {pipeline_mode = #tpu.pipeline_mode<synchronous>, transform_indices = @transform_3, window_bounds = array<i64: 8, 32>}, {pipeline_mode = #tpu.pipeline_mode<synchronous>, transform_indices = @transform_4, window_bounds = array<i64: 1, 32>}, {transform_indices = @transform_5, window_bounds = array<i64: 16, 32>}]} {
    %c0 = arith.constant 0 : index
    %c0_0 = arith.constant 0 : index
    %0 = vector.load %arg1[%c0, %c0_0] : memref<16x32xf32, #tpu.memory_space<vmem>>, vector<16x32xf32>
    %c0_1 = arith.constant 0 : index
    %c0_2 = arith.constant 0 : index
    %1 = vector.load %arg2[%c0_1, %c0_2] : memref<32x8xf32, #tpu.memory_space<vmem>>, vector<32x8xf32>
    %cst = arith.constant dense<0.000000e+00> : vector<16x8xf32>
    %2 = tpu.matmul %0, %1, %cst {dimension_numbers = #tpu.dot_dimension_numbers<[1], [0], [0], [1], [0, 0, 1, 1], [], []>} : vector<16x32xf32>, vector<32x8xf32>, vector<16x8xf32> -> vector<16x8xf32>
    %c0_3 = arith.constant 0 : index
    %c0_4 = arith.constant 0 : index
    %3 = vector.load %arg3[%c0_3, %c0_4] : memref<1x8xf32, #tpu.memory_space<vmem>>, vector<1x8xf32>
    %4 = vector.broadcast %3 : vector<1x8xf32> to vector<16x8xf32>
    %5 = arith.addf %2, %4 : vector<16x8xf32>
    %cst_5 = arith.constant 5.000000e-01 : f32
    %6 = vector.broadcast %cst_5 : f32 to vector<16x8xf32>
    %7 = arith.mulf %6, %5 : vector<16x8xf32>
    %cst_6 = arith.constant 0.707106769 : f32
    %8 = vector.broadcast %cst_6 : f32 to vector<16x8xf32>
    %9 = arith.mulf %5, %8 : vector<16x8xf32>
    %10 = math.erf %9 : vector<16x8xf32>
    %cst_7 = arith.constant 1.000000e+00 : f32
    %11 = vector.broadcast %cst_7 : f32 to vector<16x8xf32>
    %12 = arith.addf %11, %10 : vector<16x8xf32>
    %13 = arith.mulf %7, %12 : vector<16x8xf32>
    %c0_8 = arith.constant 0 : index
    %c0_9 = arith.constant 0 : index
    %14 = vector.load %arg4[%c0_8, %c0_9] : memref<8x32xf32, #tpu.memory_space<vmem>>, vector<8x32xf32>
    %cst_10 = arith.constant dense<0.000000e+00> : vector<16x32xf32>
    %15 = tpu.matmul %13, %14, %cst_10 {dimension_numbers = #tpu.dot_dimension_numbers<[1], [0], [0], [1], [0, 0, 1, 1], [], []>} : vector<16x8xf32>, vector<8x32xf32>, vector<16x32xf32> -> vector<16x32xf32>
    %c0_11 = arith.constant 0 : index
    %c0_12 = arith.constant 0 : index
    %16 = vector.load %arg5[%c0_11, %c0_12] : memref<1x32xf32, #tpu.memory_space<vmem>>, vector<1x32xf32>
    %17 = vector.broadcast %16 : vector<1x32xf32> to vector<16x32xf32>
    %18 = arith.addf %15, %17 : vector<16x32xf32>
    %19 = arith.addf %18, %0 : vector<16x32xf32>
    %c0_13 = arith.constant 0 : index
    %c0_14 = arith.constant 0 : index
    %20 = vector.load %arg6[%c0_13, %c0_14] : memref<16x32xf32, #tpu.memory_space<vmem>>, vector<16x32xf32>
    tpu.vector_store %arg6[%c0_13, %c0_14], %19 {strides = array<i32>} : memref<16x32xf32, #tpu.memory_space<vmem>>, vector<16x32xf32>,
    return
  }
  func.func @transform_0(%arg0: i32) -> (i32, i32) {
    %c0_i32 = arith.constant 0 : i32
    %c0_i32_0 = arith.constant 0 : i32
    return %arg0, %c0_i32 : i32, i32
  }
  func.func @transform_1(%arg0: i32) -> (i32, i32) {
    %c0_i32 = arith.constant 0 : i32
    %c0_i32_0 = arith.constant 0 : i32
    %c0_i32_1 = arith.constant 0 : i32
    return %c0_i32, %c0_i32_0 : i32, i32
  }
  func.func @transform_2(%arg0: i32) -> (i32, i32) {
    %c0_i32 = arith.constant 0 : i32
    %c0_i32_0 = arith.constant 0 : i32
    %c0_i32_1 = arith.constant 0 : i32
    return %c0_i32, %c0_i32_0 : i32, i32
  }
  func.func @transform_3(%arg0: i32) -> (i32, i32) {
    %c0_i32 = arith.constant 0 : i32
    %c0_i32_0 = arith.constant 0 : i32
    %c0_i32_1 = arith.constant 0 : i32
    return %c0_i32, %c0_i32_0 : i32, i32
  }
  func.func @transform_4(%arg0: i32) -> (i32, i32) {
    %c0_i32 = arith.constant 0 : i32
    %c0_i32_0 = arith.constant 0 : i32
    %c0_i32_1 = arith.constant 0 : i32
    return %c0_i32, %c0_i32_0 : i32, i32
  }
  func.func @transform_5(%arg0: i32) -> (i32, i32) {
    %c0_i32 = arith.constant 0 : i32
    %c0_i32_0 = arith.constant 0 : i32
    return %arg0, %c0_i32 : i32, i32
  }
}

</mosaic_0001>

<bundles_post_ra>
// kernel: tpu_custom_call.1
= control target key start
LH: loop header
LB: loop body
LE: loop exit
PB: predicated region body
PF: predicated region fallthrough
CT: control target
= control target key end

     0   :  { %6 = vsyncpa [#allocation3], 0  ;;  %s341_s0 = inlined_call_operand.hbm [shape: f32[8,128], index: 0, kind: input, shape index: {}]   ;;  %s342_s1 = inlined_call_operand.hbm [shape: f32[8,128], index: 1, kind: output, shape index: {}]  }
   0x1   :  { %7 = vsyncpa [#allocation4], 0  ;;  %s262_s6 = smov 0  }
   0x2 LB: > { %s145_s7 = sadd.s32 4294967295, %s248_s6   ;;  %p146_p0 = scmp.ge.s32.totalorder %s248_s6, 1  ;;  %s248_s6 = sphi %s262_s6, %s13_s6  }
   0x3   : > { %p60_p1 = scmp.lt.s32.totalorder %s248_s6, 3  ;;  %p276_p3 = scmp.eq.s32.totalorder %s145_s7, 0 }
   0x4   : > { %s250_s10 = smov [#allocation2]   ;;  %s180_s15 = scalar_lea.hbm %s341_s0, 128 }
   0x5   : > { %p270_p2 = pnand %p146_p0, %p60_p1  ;;  %s73_s11 = sshll.u32 %s250_s10, 4  ;;  %s74_s11 = int_to_ptr.vmem [resolvable:$true] %s73_s11 }
   0x6   : > { %s347_s9 = scalar_select %p276_p3, 1, 0 }
   0x7   : > { %s346_s8 = scalar_select %p270_p2, 1, 0 }
   0x8   : > { %p162_p4 = pneg %p270_p2  ;;  %p181_p6 = scmp.ne.s32.totalorder %s341_s0, %s180_s15 }
   0x9   : > { %p187_p10 = scmp.lt.u32.totalorder %s180_s15, %s341_s0 }
   0xa   : > { %p284_p5 = pnand %p276_p3, %p162_p4 }
   0xc   : > { %p182_p7 = pneg %p284_p5 }
   0xe   : > { %p183_p8 = pnand %p182_p7, %p181_p6 }
  0x10   : > { %p184_p9 = pneg %p183_p8 }
  0x12   : > { %p189_p11 = pnand %p187_p10, %p184_p9 }
  0x14   : > { %192 = shalt.err (!%p189_p11)
}
  0x15   : > { %s193_s20 = scalar_lea.vmem %s74_s11, 128  ;;  %p201_p1 = scmp.lt.s32.totalorder %s74_s11, %s74_s11 }
  0x16   : > { %p194_p12 = scmp.ne.s32.totalorder %s74_s11, %s193_s20  ;;  %p202_p4 = scmp.lt.s32.totalorder %s193_s20, %s193_s20 }
  0x18   : > { %p196_p13 = pnand %p194_p12, %p182_p7  ;;  %p203_p3 = por %p202_p4, %p201_p1 }
  0x1a   : > { %p197_p0 = pneg %p196_p13 }
  0x1c   : > { %p204_p2 = pnand %p203_p3, %p197_p0 }
  0x1e   : > { %207 = shalt.err (!%p204_p2)
}
  0x1f   : > { %165 = dma.hbm_to_vmem [thread:$0]  (!%p284_p5), %s341_s0, 128, %s74_s11, [#allocation3]  }
  0x20   : > { %p349_p6 = scmp.ne.s32.totalorder %s346_s8, 0 }
  0x21   : > { %p350_p8 = scmp.ne.s32.totalorder (!%p349_p6), %s347_s9, 0 }
  0x22   : > { %86 = sbr.rel (%p349_p6) target bundleno = 67 (0x43), region = 24 }
  0x29   : > { %239 = dma.done.wait (%p350_p8), [#allocation3], 128  }
  0x2a   : > { %241 = vsyncadd (%p350_p8), [#allocation3], 4294967168  ;;  %s251_s23 = smov [#allocation5]   ;;  %v96_v0 = vld [vmem:[#allocation2] sm:$0xff]  ;;  %p312_p2 = scmp.eq.s32.totalorder %s145_s7, 1 }
  0x2b   : > { %s106_s24 = sshll.u32 %s251_s23, 4  ;;  %v97_v1 = vadd.f32 1.0, %v96_v0  ;;  %s107_s24 = int_to_ptr.vmem [resolvable:$true] %s106_s24 }
  0x2c   : > { %s208_s26 = scalar_lea.vmem %s107_s24, 128  ;;  %p215_p9 = scmp.lt.s32.totalorder %s107_s24, %s107_s24 }
  0x2d   : > { %98 = vst [vmem:[#allocation5] sm:$0xff] %v97_v1  ;;  %p209_p3 = scmp.ne.s32.totalorder %s107_s24, %s208_s26  ;;  %p216_p10 = scmp.lt.s32.totalorder %s208_s26, %s208_s26 }
  0x2f   : > { %p210_p5 = pnand %p209_p3, %p312_p2  ;;  %p217_p11 = por %p216_p10, %p215_p9 }
  0x31   : > { %p211_p7 = pneg %p210_p5 }
  0x33   : > { %p218_p12 = pnand %p217_p11, %p211_p7 }
  0x35   : > { %221 = shalt.err (!%p218_p12)
}
  0x36   : > { %s222_s29 = scalar_lea.hbm %s342_s1, 128 }
  0x37   : > { %p223_p13 = scmp.ne.s32.totalorder %s342_s1, %s222_s29  ;;  %p228_p4 = scmp.lt.u32.totalorder %s222_s29, %s342_s1 }
  0x39   : > { %p224_p0 = pnand %p223_p13, %p312_p2 }
  0x3b   : > { %p225_p1 = pneg %p224_p0 }
  0x3d   : > { %p230_p6 = pnand %p228_p4, %p225_p1 }
  0x3f   : > { %233 = shalt.err (!%p230_p6)
}
  0x40   : > { %159 = dma.vmem_to_hbm [thread:$0]  (%p312_p2), %s107_s24, 128, %s342_s1, [#allocation4]  }
  0x41   : > { %243 = dma.done.wait (%p312_p2), [#allocation4], 128  }
  0x42   : > { %245 = vsyncadd (%p312_p2), [#allocation4], 4294967168 }
  0x43 PF: > { %s13_s6 = sadd.s32 1, %s248_s6  }
  0x44   : > { %p10_p8 = scmp.ge.s32.totalorder %s13_s6, 4  }
  0x46   :  { %12 = sbr.rel (!%p10_p8) target bundleno = 2 (0x2), region = 53 }
  0x4d   :  { %119 = vsyncpa [#allocation3], 1 }
  0x4e   :  { %121 = vsyncpa [#allocation3 + $0x1], 1 }
  0x4f   :  { %122 = vsyncpa [#allocation4], 1 }
  0x50   :  { %124 = vsyncpa [#allocation4 + $0x1], 1 }

// kernel: _adapter_jit.1
= control target key start
LH: loop header
LB: loop body
LE: loop exit
PB: predicated region body
PF: predicated region fallthrough
CT: control target
= control target key end

     0   :  { %10 = vsyncpa [#allocation3], 0  ;;  %s615_s0 = inlined_call_operand.hbm [shape: f32[16,32], index: 0, kind: input, shape index: {}]   ;;  %s616_s1 = inlined_call_operand.hbm [shape: f32[32,8], index: 1, kind: input, shape index: {}]   ;;  %s617_s2 = inlined_call_operand.hbm [shape: f32[1,8], index: 2, kind: input, shape index: {}]   ;;  %s618_s3 = inlined_call_operand.hbm [shape: f32[8,32], index: 3, kind: input, shape index: {}]   ;;  %s619_s4 = inlined_call_operand.hbm [shape: f32[1,32], index: 4, kind: input, shape index: {}]   ;;  %s620_s5 = inlined_call_operand.hbm [shape: f32[16,32], index: 5, kind: output, shape index: {}]  }
   0x1   :  { %11 = vsyncpa [#allocation6], 0 }
   0x2   :  { %12 = vsyncpa [#allocation9], 0 }
   0x3   :  { %13 = vsyncpa [#allocation4], 0  ;;  %s492_s18 = smov [#allocation5]   ;;  %s493_s20 = smov [#allocation8]  }
   0x4   :  { %s31_s19 = sshll.u32 %s492_s18, 4  ;;  %s54_s21 = sshll.u32 %s493_s20, 4  ;;  %s32_s19 = int_to_ptr.vmem [resolvable:$true] %s31_s19  ;;  %s55_s21 = int_to_ptr.vmem [resolvable:$true] %s54_s21 }
   0x5   :  { %s352_s24 = scalar_lea.hbm %s616_s1, 512 }
   0x6   :  { %p353_p0 = scmp.ne.s32.totalorder %s616_s1, %s352_s24  ;;  %p356_p1 = scmp.lt.u32.totalorder %s352_s24, %s616_s1 }
   0x8   :  { %p358_p2 = pnand %p356_p1, %p353_p0 }
   0xa   :  { %361 = shalt.err (!%p358_p2)
}
   0xb   :  { %s362_s29 = scalar_lea.vmem %s32_s19, 512  ;;  %p367_p4 = scmp.lt.s32.totalorder %s32_s19, %s32_s19 }
   0xc   :  { %p363_p3 = scmp.ne.s32.totalorder %s32_s19, %s362_s29  ;;  %p368_p5 = scmp.lt.s32.totalorder %s362_s29, %s362_s29 }
   0xe   :  { %p369_p6 = por %p368_p5, %p367_p4 }
  0x10   :  { %p370_p7 = pnand %p369_p6, %p363_p3 }
  0x12   :  { %373 = shalt.err (!%p370_p7)
}
  0x13   :  { %s494_s30 = smov 128   ;;  %s495_s6 = smov 8  }
  0x14   :  { %37 = dma.hbm_to_vmem [thread:$0]  %s616_s1, 512, %s32_s19, [#allocation6], %s494_s30, %s494_s30, %s495_s6  }
  0x15   :  { %s374_s11 = scalar_lea.hbm %s618_s3, 128 }
  0x16   :  { %p375_p8 = scmp.ne.s32.totalorder %s618_s3, %s374_s11  ;;  %p378_p9 = scmp.lt.u32.totalorder %s374_s11, %s618_s3 }
  0x18   :  { %p380_p10 = pnand %p378_p9, %p375_p8 }
  0x1a   :  { %383 = shalt.err (!%p380_p10)
}
  0x1b   :  { %s384_s16 = scalar_lea.vmem %s55_s21, 128  ;;  %p389_p12 = scmp.lt.s32.totalorder %s55_s21, %s55_s21 }
  0x1c   :  { %p385_p11 = scmp.ne.s32.totalorder %s55_s21, %s384_s16  ;;  %p390_p13 = scmp.lt.s32.totalorder %s384_s16, %s384_s16 }
  0x1e   :  { %p391_p0 = por %p390_p13, %p389_p12 }
  0x20   :  { %p392_p1 = pnand %p391_p0, %p385_p11 }
  0x22   :  { %395 = shalt.err (!%p392_p1)
}
  0x23   :  { %57 = dma.hbm_to_vmem [thread:$0]  %s618_s3, 128, %s55_s21, [#allocation9]  }
  0x24   :  { %s496_s18 = smov [#allocation2]   ;;  %s497_s20 = smov [#allocation7]  }
  0x25   :  { %s19_s19 = sshll.u32 %s496_s18, 4  ;;  %s44_s22 = sshll.u32 %s497_s20, 4  ;;  %s20_s19 = int_to_ptr.vmem [resolvable:$true] %s19_s19  ;;  %s45_s22 = int_to_ptr.vmem [resolvable:$true] %s44_s22 }
  0x26   :  { %s396_s25 = scalar_lea.hbm %s615_s0, 256 }
  0x27   :  { %p397_p2 = scmp.ne.s32.totalorder %s615_s0, %s396_s25  ;;  %p400_p3 = scmp.lt.u32.totalorder %s396_s25, %s615_s0 }
  0x29   :  { %p402_p4 = pnand %p400_p3, %p397_p2 }
  0x2b   :  { %405 = shalt.err (!%p402_p4)
}
  0x2c   :  { %s406_s3 = scalar_lea.vmem %s20_s19, 256  ;;  %p411_p6 = scmp.lt.s32.totalorder %s20_s19, %s20_s19 }
  0x2d   :  { %p407_p5 = scmp.ne.s32.totalorder %s20_s19, %s406_s3  ;;  %p412_p7 = scmp.lt.s32.totalorder %s406_s3, %s406_s3 }
  0x2f   :  { %p413_p8 = por %p412_p7, %p411_p6 }
  0x31   :  { %p414_p9 = pnand %p413_p8, %p407_p5 }
  0x33   :  { %417 = shalt.err (!%p414_p9)
}
  0x34   :  { %25 = dma.hbm_to_vmem [thread:$0]  %s615_s0, 256, %s20_s19, [#allocation3], %s494_s30, %s494_s30, %s495_s6  }
  0x35   :  { %s418_s10 = scalar_lea.hbm %s617_s2, 16 }
  0x36   :  { %p419_p10 = scmp.ne.s32.totalorder %s617_s2, %s418_s10  ;;  %p422_p11 = scmp.lt.u32.totalorder %s418_s10, %s617_s2 }
  0x38   :  { %p424_p12 = pnand %p422_p11, %p419_p10 }
  0x3a   :  { %427 = shalt.err (!%p424_p12)
}
  0x3b   :  { %s428_s15 = scalar_lea.vmem %s45_s22, 16  ;;  %s432_s16 = scalar_lea.vmem %s45_s22, 32 }
  0x3c   :  { %p429_p13 = scmp.ne.s32.totalorder %s45_s22, %s428_s15  ;;  %p433_p0 = scmp.lt.s32.totalorder %s45_s22, %s45_s22 }
  0x3d   :  { %p434_p1 = scmp.lt.s32.totalorder %s432_s16, %s428_s15 }
  0x3f   :  { %p435_p2 = por %p434_p1, %p433_p0 }
  0x41   :  { %p436_p3 = pnand %p435_p2, %p429_p13 }
  0x43   :  { %439 = shalt.err (!%p436_p3)
}
  0x44   :  { %47 = dma.hbm_to_vmem [thread:$0]  %s617_s2, 16, %s45_s22, [#allocation6]  }
  0x45   :  { %s498_s17 = smov [#allocation10]   ;;  %s440_s23 = scalar_lea.hbm %s619_s4, 16 }
  0x46   :  { %s64_s18 = sshll.u32 %s498_s17, 4  ;;  %p441_p4 = scmp.ne.s32.totalorder %s619_s4, %s440_s23  ;;  %s65_s18 = int_to_ptr.vmem [resolvable:$true] %s64_s18 }
  0x47   :  { %p444_p5 = scmp.lt.u32.totalorder %s440_s23, %s619_s4 }
  0x49   :  { %p446_p6 = pnand %p444_p5, %p441_p4 }
  0x4b   :  { %449 = shalt.err (!%p446_p6)
}
  0x4c   :  { %s450_s28 = scalar_lea.vmem %s65_s18, 16  ;;  %s454_s2 = scalar_lea.vmem %s65_s18, 32 }
  0x4d   :  { %p451_p7 = scmp.ne.s32.totalorder %s65_s18, %s450_s28  ;;  %p455_p8 = scmp.lt.s32.totalorder %s65_s18, %s65_s18 }
  0x4e   :  { %p456_p9 = scmp.lt.s32.totalorder %s454_s2, %s450_s28 }
  0x50   :  { %p457_p10 = por %p456_p9, %p455_p8 }
  0x52   :  { %p458_p11 = pnand %p457_p10, %p451_p7 }
  0x54   :  { %461 = shalt.err (!%p458_p11)
}
  0x55   :  { %67 = dma.hbm_to_vmem [thread:$0]  %s619_s4, 16, %s65_s18, [#allocation9]  }
  0x56   :  { %484 = dma.done.wait [#allocation3], 256  }
  0x57   :  { %485 = vsyncadd [#allocation3], 4294967040 }
  0x58   :  { %486 = dma.done.wait [#allocation6], 528  }
  0x59   :  { %487 = vsyncadd [#allocation6], 4294966768 }
  0x5a   :  { %488 = dma.done.wait [#allocation9], 144  }
  0x5b   :  { %489 = vsyncadd [#allocation9], 4294967152  ;;  %vm96_vm0 = vcmask 261120   ;;  %v85_v0 = vld [vmem:[#allocation5] sm:$0xff]  ;;  %v86_v1 = vld [vmem:[#allocation5 + $0x8] sm:$0xff]  ;;  %vm196_vm1 = vcmask 64512  }
  0x5c   :  { %v87_v2 = vld [vmem:[#allocation5 + $0x10] sm:$0xff]  ;;  %v332_v3 = vpack.c.bf16 %v86_v1, %v85_v0  ;;  %v88_v4 = vld [vmem:[#allocation5 + $0x18] sm:$0xff]  ;;  %v188_v8 = vld [vmem:[#allocation8] sm:$0xff]  ;;  %s499_s4 = smov [#allocation11]  }
  0x5d   :  { %v83_v5 = vld [vmem:[#allocation2] sm:$0xff]  ;;  %v336_v6 = vpack.c.bf16 %v88_v4, %v87_v2  ;;  %v84_v7 = vld [vmem:[#allocation2 + $0x8] sm:$0xff]  ;;  %327 = vmatprep.subr.mxu1 %v188_v8  ;;  %v301_v9 = vld [vmem:[#allocation7] ss:$0 sm:$0xff]  ;;  %s287_s3 = sshll.u32 %s499_s4, 4  ;;  %s288_s3 = int_to_ptr.vmem [resolvable:$true] %s287_s3 }
  0x5e   :  { %324 = vmatprep.mubr.msk.f32.mxu0 %vm96_vm0, %v83_v5  ;;  %333 = vmatprep.subr.bf16.mxu0 %v332_v3  ;;  %v304_v24 = vld [vmem:[#allocation10] ss:$0 sm:$0xff]  ;;  %s462_s21 = scalar_lea.vmem %s288_s3, 256  ;;  %p467_p13 = scmp.lt.s32.totalorder %s288_s3, %s288_s3 }
  0x5f   :  { %335 = vmatpush3.bf16.msra.mxu0 %v332_v3  ;;  %328 = vmatpush3.msra.mxu1 %v188_v8  ;;  %p463_p12 = scmp.ne.s32.totalorder %s288_s3, %s462_s21  ;;  %p468_p0 = scmp.lt.s32.totalorder %s462_s21, %s462_s21 }
  0x60   :  { %337 = vmatprep.subr.bf16.mxu0 %v336_v6 }
  0x61   :  { %p469_p1 = por %p468_p0, %p467_p13 }
  0x63   :  { %339 = vmatpush3.bf16.msra.mxu0 %v336_v6  ;;  %p470_p2 = pnand %p469_p1, %p463_p12 }
  0x66   :  { %325 = vmatmul.mubr.msk.f32.vlgmr.msra.gmra.mrb[0].mxu0 %vm96_vm0, %v84_v7 }
 0x139   :  { %v326_v10 = vpop.f32.mrb[0].mxu0 }
 0x13a   :  { %v175_v11 = vadd.f32 %v326_v10, %v301_v9  ;;  %v169_v12 = vpop.f32.mrb[1].mxu0 }
 0x13b   :  { %v170_v13 = vadd.f32 %v301_v9, %v169_v12 }
 0x13c   :  { %v181_v14 = vmul.f32 0.70710677, %v175_v11  ;;  %v179_v21 = vmul.f32 0.5, %v175_v11 }
 0x13d   :  { %v180_v15 = vmul.f32 0.70710677, %v170_v13  ;;  %v178_v19 = vmul.f32 0.5, %v170_v13 }
 0x13e   :  { %348 = verf.f32 %v181_v14 }
 0x13f   :  { %350 = verf.f32 %v180_v15 }
 0x148   :  { %v349_v16 = vpop.eup %348 }
 0x149   :  { %v351_v17 = vpop.eup %350  ;;  %v185_v18 = vadd.f32 1.0, %v349_v16 }
 0x14a   :  { %v184_v20 = vadd.f32 1.0, %v351_v17 }
 0x14b   :  { %v187_v23 = vmul.f32 %v185_v18, %v179_v21 }
 0x14c   :  { %v186_v22 = vmul.f32 %v184_v20, %v178_v19 }
 0x14e   :  { %329 = vmatprep.mubr.msk.f32.mxu1 %vm196_vm1, %v186_v22 }
 0x14f   :  { %330 = vmatmul.mubr.msk.f32.vlgmr.msra.gmra.mrb[0].mxu1 %vm196_vm1, %v187_v23 }
 0x222   :  { %v331_v25 = vpop.f32.mrb[0].mxu1 }
 0x223   :  { %v275_v26 = vadd.f32 %v331_v25, %v304_v24  ;;  %v269_v27 = vpop.f32.mrb[1].mxu1 }
 0x224   :  { %v270_v28 = vadd.f32 %v304_v24, %v269_v27 }
 0x225   :  { %v279_v29 = vadd.f32 %v275_v26, %v84_v7 }
 0x226   :  { %v278_v30 = vadd.f32 %v270_v28, %v83_v5 }
 0x227   :  { %281 = vst.msk [vmem:[#allocation11 + $0x8] sm:$0xff] %vm96_vm0, %v279_v29 }
 0x228   :  { %280 = vst.msk [vmem:[#allocation11] sm:$0xff] %vm96_vm0, %v278_v30 }
 0x229   :  { %473 = shalt.err (!%p470_p2)
}
 0x22a   :  { %s474_s9 = scalar_lea.hbm %s620_s5, 256 }
 0x22b   :  { %p475_p3 = scmp.ne.s32.totalorder %s620_s5, %s474_s9  ;;  %p478_p4 = scmp.lt.u32.totalorder %s474_s9, %s620_s5 }
 0x22d   :  { %p480_p5 = pnand %p478_p4, %p475_p3 }
 0x22f   :  { %483 = shalt.err (!%p480_p5)
}
 0x230   :  { %293 = dma.vmem_to_hbm [thread:$0]  %s288_s3, 256, %s620_s5, [#allocation4], %s494_s30, %s494_s30, %s495_s6  }
 0x231   :  { %490 = dma.done.wait [#allocation4], 256  }
 0x232   :  { %491 = vsyncadd [#allocation4], 4294967040 }
 0x233   :  { %297 = vsyncpa [#allocation3], 1 }
 0x234   :  { %298 = vsyncpa [#allocation6], 1 }
 0x235   :  { %299 = vsyncpa [#allocation9], 1 }
 0x236   :  { %300 = vsyncpa [#allocation4], 1 }

</bundles_post_ra>
